<compile_context>
chip_gen: v7x
topology: tpu7x:2x2x1
jax: 0.10.0
libtpu: 0.0.40
codegen_flags: <defaults>
</compile_context>

<pallas_src>
import functools

import jax
import jax.numpy as jnp
from jax.experimental import pallas as pl
from jax.experimental.pallas import tpu as pltpu


def _round_up(x, m):
    return ((x + m - 1) // m) * m


# --------------------------------------------------------------------------- kernel
def fusion_head_kernel(x_ref, labels_ref, w1_ref, b1_ref, w2_ref, b2_ref,
                       logits_ref, rowloss_ref, *, num_labels):
    """One batch tile: [Bt,Kp]@[Kp,Dp]+b1 -> ReLU -> (Dropout eval) -> @[Dp,Lp]+b2
    -> logits, plus vectorized per-row CrossEntropy (logsumexp - picked)."""
    # fusion Linear (+bias) + ReLU; concat already folded on host -> single-K matmul
    h = jnp.dot(x_ref[...], w1_ref[...], preferred_element_type=jnp.float32)
    h = jnp.maximum(h + b1_ref[...], 0.0)
    # nn.Dropout(0.5): identity in eval mode.
    # TODO(synk): training-mode dropout (pltpu.prng_seed + stateful_bernoulli) not emitted.

    # classifier Linear
    logits = jnp.dot(h.astype(jnp.bfloat16), w2_ref[...],
                     preferred_element_type=jnp.float32) + b2_ref[...]
    logits_ref[...] = logits                                 # [Bt, Lp] lane-dense store

    # CrossEntropy, vectorized over the whole tile:
    #   row_loss = logsumexp(logits[:num_labels]) - logits[label]
    Bt, Lp = logits.shape
    col = jax.lax.broadcasted_iota(jnp.int32, (Bt, Lp), 1)
    # mask padded class columns (finite -1e30, not -inf, so 0*mask never makes NaN)
    lm = jnp.where(col < num_labels, logits, jnp.float32(-1e30))
    m = jnp.max(lm, axis=-1, keepdims=True)                              # (Bt, 1)
    lse = m + jnp.log(jnp.sum(jnp.exp(lm - m), axis=-1, keepdims=True))  # (Bt, 1)
    lbl = labels_ref[...]                                                # (Bt, 1) int32
    # TODO(synk): no ignore_index handling; labels assumed in [0, num_labels).
    picked = jnp.sum(jnp.where(col == lbl, lm, 0.0), axis=-1, keepdims=True)
    rowloss_ref[...] = jnp.broadcast_to(lse - picked, rowloss_ref.shape)


# --------------------------------------------------------------------------- wrapper
def prepare_fusion_params(w1, b1, w2, b2):
    """Pad fusion / classifier params to 128-lane tiles ONCE (outside the hot path)."""
    K, D = w1.shape
    L = w2.shape[1]
    Kp, Dp, Lp = _round_up(K, 128), _round_up(D, 128), _round_up(L, 128)
    return {
        "w1": jnp.zeros((Kp, Dp), jnp.bfloat16).at[:K, :D].set(w1.astype(jnp.bfloat16)),
        "b1": jnp.zeros((1, Dp), jnp.float32).at[:, :D].set(
            b1.reshape(1, D).astype(jnp.float32)),
        "w2": jnp.zeros((Dp, Lp), jnp.bfloat16).at[:D, :L].set(w2.astype(jnp.bfloat16)),
        "b2": jnp.zeros((1, Lp), jnp.float32).at[:, :L].set(
            b2.reshape(1, L).astype(jnp.float32)),
    }


def fusion_head(fused, labels, fp, *, num_labels, tile_b_max=256):
    """fused: [B, Ht+Hi] f32 pooled + concatenated encoder features."""
    B, K = fused.shape
    Kp, Dp = fp["w1"].shape
    Lp = fp["w2"].shape[1]
    L = num_labels

    # batch -> sublane tile (8); batch-grid tile capped at tile_b_max rows
    Bp8 = _round_up(max(B, 8), 8)
    tile_b = min(tile_b_max, Bp8)
    Bp = _round_up(Bp8, tile_b)
    n_tiles = Bp // tile_b

    # Only activations / labels are padded per call; weights were padded once at init.
    x_p = jnp.zeros((Bp, Kp), jnp.bfloat16).at[:B, :K].set(fused.astype(jnp.bfloat16))
    labels_p = jnp.zeros((Bp, 1), jnp.int32).at[:B, 0].set(labels.astype(jnp.int32))

    flops = 2 * Bp * Kp * Dp + 2 * Bp * Dp * Lp
    bytes_accessed = (x_p.size * 2 + labels_p.size * 4
                      + fp["w1"].size * 2 + fp["w2"].size * 2
                      + fp["b1"].size * 4 + fp["b2"].size * 4
                      + Bp * Lp * 4 + Bp * 128 * 4)

    # VMEM budget: double-buffered streams + resident weights + f32 intermediates.
    vmem_bytes = (2 * (tile_b * Kp * 2 + tile_b * 4 + tile_b * Lp * 4 + tile_b * 128 * 4)
                  + 2 * (Kp * Dp * 2 + Dp * 4 + Dp * Lp * 2 + Lp * 4)
                  + tile_b * Dp * 4 + 4 * tile_b * Lp * 4 + (4 << 20))
    # cap at v7x's 64 MiB physical VMEM; shrink tile_b_max if this ever binds
    vmem_limit = min(vmem_bytes, 64 << 20)

    kernel = functools.partial(fusion_head_kernel, num_labels=L)
    logits_p, rowloss = pl.pallas_call(
        kernel,
        out_shape=(jax.ShapeDtypeStruct((Bp, Lp), jnp.float32),
                   jax.ShapeDtypeStruct((Bp, 128), jnp.float32)),
        grid=(n_tiles,),
        in_specs=[
            pl.BlockSpec((tile_b, Kp), lambda i: (i, 0)),   # x: streamed per batch tile
            pl.BlockSpec((tile_b, 1), lambda i: (i, 0)),    # labels: streamed per tile
            pl.BlockSpec((Kp, Dp), lambda i: (0, 0)),       # weights: resident across grid
            pl.BlockSpec((1, Dp), lambda i: (0, 0)),
            pl.BlockSpec((Dp, Lp), lambda i: (0, 0)),
            pl.BlockSpec((1, Lp), lambda i: (0, 0)),
        ],
        out_specs=(
            pl.BlockSpec((tile_b, Lp), lambda i: (i, 0)),   # logits, lane-dense
            pl.BlockSpec((tile_b, 128), lambda i: (i, 0)),  # per-row loss, lane-dense
        ),
        compiler_params=pltpu.CompilerParams(
            dimension_semantics=("parallel",),   # v7x: shard batch tiles over 2 TCs
            vmem_limit_bytes=vmem_limit),
        cost_estimate=pl.CostEstimate(flops=flops, transcendentals=Bp * Lp,
                                      bytes_accessed=bytes_accessed),
    )(x_p, labels_p, fp["w1"], fp["b1"], fp["w2"], fp["b2"])

    # mean over the real rows only (padded rows never enter the sum)
    loss = jnp.sum(rowloss[:B, 0]) * (1.0 / B)
    return logits_p[:B, :L], loss


# ----------------------------------------------------------------------------- glue
# TODO(synk): pretrained BERT / ViT encoders are not translatable; deterministic
# stand-in poolers below only produce pooled features of the right shape/dtype.
def toy_text_pooler(input_ids, emb, w_pool):
    x = jnp.mean(emb[input_ids], axis=1)   # (B, S, Ht) -> (B, Ht)
    return jnp.tanh(x @ w_pool)            # ~ BERT pooler_output


def toy_image_pooler(pixel_values, w_proj):
    B = pixel_values.shape[0]
    x = pixel_values.reshape(B, -1)        # NCHW -> (B, C*H*W)
    return jnp.tanh(x @ w_proj)            # ~ ViT pooler_output


@functools.partial(jax.jit, static_argnames=("num_labels",))
def multimodal_vqa_forward(input_ids, pixel_values, labels, enc_params, fusion_params,
                           *, num_labels):
    """Whole pipeline under one jit so pooled features don't bounce through extra
    XLA launches / HBM writebacks before the Pallas fusion-head kernel."""
    text_pooled = toy_text_pooler(input_ids, enc_params["emb"], enc_params["w_pool"])
    img_pooled = toy_image_pooler(pixel_values, enc_params["w_proj"])
    # concat folded here -> single-K matmul inside the kernel
    fused = jnp.concatenate([text_pooled, img_pooled], axis=1)
    logits, loss = fusion_head(fused, labels, fusion_params, num_labels=num_labels)
    return logits, loss, fused


if __name__ == "__main__":
    key = jax.random.PRNGKey(0)
    ks = jax.random.split(key, 10)

    # small, module-consistent shapes
    B, S, VOCAB = 2, 8, 100
    C, H, W_img = 3, 16, 16
    HT, HI = 32, 32          # text / image hidden sizes
    DIM = 64                 # intermediate_dim
    NUM_LABELS = 8

    input_ids = jax.random.randint(ks[0], (B, S), 0, VOCAB)
    pixel_values = jax.random.normal(ks[1], (B, C, H, W_img), dtype=jnp.float32)
    labels = jax.random.randint(ks[2], (B,), 0, NUM_LABELS)

    enc_params = {
        # deterministic stand-in encoder params
        "emb": jax.random.normal(ks[3], (VOCAB, HT), dtype=jnp.float32) * 0.02,
        "w_pool": jax.random.normal(ks[4], (HT, HT), dtype=jnp.float32) * 0.05,
        "w_proj": jax.random.normal(ks[5], (C * H * W_img, HI), dtype=jnp.float32) * 0.02,
    }
    # fusion / classifier params (nn.Linear, stored [in, out])
    w1 = jax.random.normal(ks[6], (HT + HI, DIM), dtype=jnp.float32) * 0.05
    b1 = jax.random.normal(ks[7], (DIM,), dtype=jnp.float32) * 0.01
    w2 = jax.random.normal(ks[8], (DIM, NUM_LABELS), dtype=jnp.float32) * 0.05
    b2 = jax.random.normal(ks[9], (NUM_LABELS,), dtype=jnp.float32) * 0.01

    # pad fusion / classifier weights ONCE, outside the per-step path
    fusion_params = prepare_fusion_params(w1, b1, w2, b2)

    logits, loss, fused = multimodal_vqa_forward(
        input_ids, pixel_values, labels, enc_params, fusion_params,
        num_labels=NUM_LABELS)
    jax.block_until_ready((logits, loss))

    # sanity check vs plain-JAX reference (same bf16-operand / f32-accumulate contract)
    h_ref = jnp.maximum(
        jnp.dot(fused.astype(jnp.bfloat16), w1.astype(jnp.bfloat16),
                preferred_element_type=jnp.float32) + b1, 0.0)
    logits_ref = jnp.dot(h_ref.astype(jnp.bfloat16), w2.astype(jnp.bfloat16),
                         preferred_element_type=jnp.float32) + b2
    lse = jax.scipy.special.logsumexp(logits_ref, axis=-1)
    loss_ref = jnp.mean(lse - logits_ref[jnp.arange(B), labels])

    assert jnp.allclose(logits, logits_ref, atol=1e-4, rtol=1e-4), \
        float(jnp.max(jnp.abs(logits - logits_ref)))
    assert jnp.allclose(loss, loss_ref, atol=1e-4, rtol=1e-4), (float(loss), float(loss_ref))

    print("KERNEL_OK")
</pallas_src>

<mosaic_0001>
module attributes {stable_mosaic.version = 11 : i64} {
  func.func @fusion_head_kernel(%arg0: i32, %arg1: memref<8x128xbf16, #tpu.memory_space<vmem>>, %arg2: memref<8x1xi32, #tpu.memory_space<vmem>>, %arg3: memref<128x128xbf16, #tpu.memory_space<vmem>>, %arg4: memref<1x128xf32, #tpu.memory_space<vmem>>, %arg5: memref<128x128xbf16, #tpu.memory_space<vmem>>, %arg6: memref<1x128xf32, #tpu.memory_space<vmem>>, %arg7: memref<8x128xf32, #tpu.memory_space<vmem>>, %arg8: memref<8x128xf32, #tpu.memory_space<vmem>>) attributes {dimension_semantics = [#tpu.dimension_semantics<parallel>], iteration_bounds = array<i64: 1>, scalar_prefetch = 0 : i64, scratch_operands = 0 : i64, tpu.core_type = #tpu.core_type<tc>, window_params = [{transform_indices = @transform_0, window_bounds = array<i64: 8, 128>}, {transform_indices = @transform_1, window_bounds = array<i64: 8, 1>}, {pipeline_mode = #tpu.pipeline_mode<synchronous>, transform_indices = @transform_2, window_bounds = array<i64: 128, 128>}, {pipeline_mode = #tpu.pipeline_mode<synchronous>, transform_indices = @transform_3, window_bounds = array<i64: 1, 128>}, {pipeline_mode = #tpu.pipeline_mode<synchronous>, transform_indices = @transform_4, window_bounds = array<i64: 128, 128>}, {pipeline_mode = #tpu.pipeline_mode<synchronous>, transform_indices = @transform_5, window_bounds = array<i64: 1, 128>}, {transform_indices = @transform_6, window_bounds = array<i64: 8, 128>}, {transform_indices = @transform_7, window_bounds = array<i64: 8, 128>}]} {
    %c0 = arith.constant 0 : index
    %c0_0 = arith.constant 0 : index
    %0 = vector.load %arg1[%c0, %c0_0] : memref<8x128xbf16, #tpu.memory_space<vmem>>, vector<8x128xbf16>
    %c0_1 = arith.constant 0 : index
    %c0_2 = arith.constant 0 : index
    %1 = vector.load %arg3[%c0_1, %c0_2] : memref<128x128xbf16, #tpu.memory_space<vmem>>, vector<128x128xbf16>
    %cst = arith.constant dense<0.000000e+00> : vector<8x128xf32>
    %2 = tpu.matmul %0, %1, %cst {dimension_numbers = #tpu.dot_dimension_numbers<[1], [0], [0], [1], [0, 0, 1, 1], [], []>} : vector<8x128xbf16>, vector<128x128xbf16>, vector<8x128xf32> -> vector<8x128xf32>
    %c0_3 = arith.constant 0 : index
    %c0_4 = arith.constant 0 : index
    %3 = vector.load %arg4[%c0_3, %c0_4] : memref<1x128xf32, #tpu.memory_space<vmem>>, vector<1x128xf32>
    %4 = vector.broadcast %3 : vector<1x128xf32> to vector<8x128xf32>
    %5 = arith.addf %2, %4 : vector<8x128xf32>
    %cst_5 = arith.constant 0.000000e+00 : f32
    %6 = vector.broadcast %cst_5 : f32 to vector<8x128xf32>
    %7 = arith.maximumf %5, %6 : vector<8x128xf32>
    %8 = arith.truncf %7 : vector<8x128xf32> to vector<8x128xbf16>
    %c0_6 = arith.constant 0 : index
    %c0_7 = arith.constant 0 : index
    %9 = vector.load %arg5[%c0_6, %c0_7] : memref<128x128xbf16, #tpu.memory_space<vmem>>, vector<128x128xbf16>
    %cst_8 = arith.constant dense<0.000000e+00> : vector<8x128xf32>
    %10 = tpu.matmul %8, %9, %cst_8 {dimension_numbers = #tpu.dot_dimension_numbers<[1], [0], [0], [1], [0, 0, 1, 1], [], []>} : vector<8x128xbf16>, vector<128x128xbf16>, vector<8x128xf32> -> vector<8x128xf32>
    %c0_9 = arith.constant 0 : index
    %c0_10 = arith.constant 0 : index
    %11 = vector.load %arg6[%c0_9, %c0_10] : memref<1x128xf32, #tpu.memory_space<vmem>>, vector<1x128xf32>
    %12 = vector.broadcast %11 : vector<1x128xf32> to vector<8x128xf32>
    %13 = arith.addf %10, %12 : vector<8x128xf32>
    %c0_11 = arith.constant 0 : index
    %c0_12 = arith.constant 0 : index
    %14 = vector.load %arg7[%c0_11, %c0_12] : memref<8x128xf32, #tpu.memory_space<vmem>>, vector<8x128xf32>
    tpu.vector_store %arg7[%c0_11, %c0_12], %13 {strides = array<i32>} : memref<8x128xf32, #tpu.memory_space<vmem>>, vector<8x128xf32>,
    %15 = tpu.iota {dimensions = array<i32: 1>} : vector<8x128xi32>
    %c8_i32 = arith.constant 8 : i32
    %16 = vector.broadcast %c8_i32 : i32 to vector<8x128xi32>
    %17 = arith.cmpi slt, %15, %16 : vector<8x128xi32>
    %cst_13 = arith.constant -1.000000e+30 : f32
    %18 = vector.broadcast %cst_13 : f32 to vector<8x128xf32>
    %19 = arith.select %17, %13, %18 : vector<8x128xi1>, vector<8x128xf32>
    %cst_14 = arith.constant dense<0xFF800000> : vector<8xf32>
    %20 = vector.multi_reduction <maximumf>, %19, %cst_14 [1] : vector<8x128xf32> to vector<8xf32>
    %21 = vector.shape_cast %20 : vector<8xf32> to vector<8x1xf32>
    %22 = vector.broadcast %21 : vector<8x1xf32> to vector<8x128xf32>
    %23 = arith.subf %19, %22 : vector<8x128xf32>
    %24 = math.exp %23 : vector<8x128xf32>
    %cst_15 = arith.constant dense<0.000000e+00> : vector<8xf32>
    %25 = vector.multi_reduction <add>, %24, %cst_15 [1] : vector<8x128xf32> to vector<8xf32>
    %26 = vector.shape_cast %25 : vector<8xf32> to vector<8x1xf32>
    %27 = math.log %26 : vector<8x1xf32>
    %28 = arith.addf %21, %27 : vector<8x1xf32>
    %c0_16 = arith.constant 0 : index
    %c0_17 = arith.constant 0 : index
    %29 = vector.load %arg2[%c0_16, %c0_17] : memref<8x1xi32, #tpu.memory_space<vmem>>, vector<8x1xi32>
    %30 = vector.broadcast %29 : vector<8x1xi32> to vector<8x128xi32>
    %31 = arith.cmpi eq, %15, %30 : vector<8x128xi32>
    %cst_18 = arith.constant 0.000000e+00 : f32
    %32 = vector.broadcast %cst_18 : f32 to vector<8x128xf32>
    %33 = arith.select %31, %19, %32 : vector<8x128xi1>, vector<8x128xf32>
    %cst_19 = arith.constant dense<0.000000e+00> : vector<8xf32>
    %34 = vector.multi_reduction <add>, %33, %cst_19 [1] : vector<8x128xf32> to vector<8xf32>
    %35 = vector.shape_cast %34 : vector<8xf32> to vector<8x1xf32>
    %36 = arith.subf %28, %35 : vector<8x1xf32>
    %37 = vector.shape_cast %36 : vector<8x1xf32> to vector<8x1xf32>
    %38 = vector.broadcast %37 : vector<8x1xf32> to vector<8x128xf32>
    %c0_20 = arith.constant 0 : index
    %c0_21 = arith.constant 0 : index
    %39 = vector.load %arg8[%c0_20, %c0_21] : memref<8x128xf32, #tpu.memory_space<vmem>>, vector<8x128xf32>
    tpu.vector_store %arg8[%c0_20, %c0_21], %38 {strides = array<i32>} : memref<8x128xf32, #tpu.memory_space<vmem>>, vector<8x128xf32>,
    return
  }
  func.func @transform_0(%arg0: i32) -> (i32, i32) {
    %c0_i32 = arith.constant 0 : i32
    %c0_i32_0 = arith.constant 0 : i32
    return %arg0, %c0_i32 : i32, i32
  }
  func.func @transform_1(%arg0: i32) -> (i32, i32) {
    %c0_i32 = arith.constant 0 : i32
    %c0_i32_0 = arith.constant 0 : i32
    return %arg0, %c0_i32 : i32, i32
  }
  func.func @transform_2(%arg0: i32) -> (i32, i32) {
    %c0_i32 = arith.constant 0 : i32
    %c0_i32_0 = arith.constant 0 : i32
    %c0_i32_1 = arith.constant 0 : i32
    return %c0_i32, %c0_i32_0 : i32, i32
  }
  func.func @transform_3(%arg0: i32) -> (i32, i32) {
    %c0_i32 = arith.constant 0 : i32
    %c0_i32_0 = arith.constant 0 : i32
    %c0_i32_1 = arith.constant 0 : i32
    return %c0_i32, %c0_i32_0 : i32, i32
  }
  func.func @transform_4(%arg0: i32) -> (i32, i32) {
    %c0_i32 = arith.constant 0 : i32
    %c0_i32_0 = arith.constant 0 : i32
    %c0_i32_1 = arith.constant 0 : i32
    return %c0_i32, %c0_i32_0 : i32, i32
  }
  func.func @transform_5(%arg0: i32) -> (i32, i32) {
    %c0_i32 = arith.constant 0 : i32
    %c0_i32_0 = arith.constant 0 : i32
    %c0_i32_1 = arith.constant 0 : i32
    return %c0_i32, %c0_i32_0 : i32, i32
  }
  func.func @transform_6(%arg0: i32) -> (i32, i32) {
    %c0_i32 = arith.constant 0 : i32
    %c0_i32_0 = arith.constant 0 : i32
    return %arg0, %c0_i32 : i32, i32
  }
  func.func @transform_7(%arg0: i32) -> (i32, i32) {
    %c0_i32 = arith.constant 0 : i32
    %c0_i32_0 = arith.constant 0 : i32
    return %arg0, %c0_i32 : i32, i32
  }
}

</mosaic_0001>

<bundles_post_ra>
// kernel: multimodal_vqa_forward.1
= control target key start
LH: loop header
LB: loop body
LE: loop exit
PB: predicated region body
PF: predicated region fallthrough
CT: control target
= control target key end

     0   :  { %v384_v0 = vmov 0.0   ;;  %vm385_vm0 = vmmov 0   ;;  %v386_v26 = vmov 0   ;;  %v252_v27 = vlaneseq  ;;  %s493_s2 = inlined_call_operand.vmem [shape: bf16[128,128], index: 2, kind: input, shape index: {}]   ;;  %s494_s4 = inlined_call_operand.vmem [shape: bf16[128,128], index: 4, kind: input, shape index: {}]   ;;  %s495_s0 = inlined_call_operand.vmem [shape: bf16[8,128], index: 0, kind: input, shape index: {}]   ;;  %s496_s3 = inlined_call_operand.vmem [shape: f32[1,128], index: 3, kind: input, shape index: {}]   ;;  %s497_s5 = inlined_call_operand.vmem [shape: f32[1,128], index: 5, kind: input, shape index: {}]   ;;  %s498_s6 = inlined_call_operand.vmem [shape: f32[8,128], index: 6, kind: output, shape index: {0}]   ;;  %s499_s1 = inlined_call_operand.vmem [shape: s32[8,1], index: 1, kind: input, shape index: {}]   ;;  %s500_s7 = inlined_call_operand.vmem [shape: f32[8,128], index: 7, kind: output, shape index: {1}]  }
   0x1   :  { %320 = vmatprep.subr.bf16.mxu0 %v384_v0  ;;  %v364_v1 = vld [vmem:[%s493_s2] sm:$0xff]   ;;  %336 = vmatprep.mubr.msk.bf16.mxu0 %vm385_vm0, %v384_v0  ;;  %v365_v2 = vld [vmem:[%s493_s2 + $0x8] sm:$0xff]   ;;  %v366_v3 = vld [vmem:[%s493_s2 + $0x10] sm:$0xff]  }
   0x2   :  { %340 = vmatprep.subr.bf16.mxu1 %v384_v0  ;;  %356 = vmatprep.mubr.msk.bf16.mxu1 %vm385_vm0, %v384_v0  ;;  %v372_v4 = vld [vmem:[%s494_s4] sm:$0xff]   ;;  %v367_v5 = vld [vmem:[%s493_s2 + $0x18] sm:$0xff]   ;;  %v373_v6 = vld [vmem:[%s494_s4 + $0x8] sm:$0xff]   ;;  %v253_v28 = vand.u32 127, %v252_v27 }
   0x3   :  { %321 = vmatpush3.bf16.msra.mxu0 %v364_v1  ;;  %341 = vmatpush3.bf16.msra.mxu1 %v372_v4  ;;  %v368_v7 = vld [vmem:[%s493_s2 + $0x20] sm:$0xff]   ;;  %v374_v8 = vld [vmem:[%s494_s4 + $0x10] sm:$0xff]   ;;  %v369_v9 = vld [vmem:[%s493_s2 + $0x28] sm:$0xff]  }
   0x4   :  { %322 = vmatprep.subr.bf16.mxu0 %v384_v0  ;;  %342 = vmatprep.subr.bf16.mxu1 %v384_v0  ;;  %v375_v10 = vld [vmem:[%s494_s4 + $0x18] sm:$0xff]   ;;  %v370_v11 = vld [vmem:[%s493_s2 + $0x30] sm:$0xff]   ;;  %v376_v12 = vld [vmem:[%s494_s4 + $0x20] sm:$0xff]   ;;  %vm254_vm1 = vcmp.lt.s32.totalorder %v253_v28, 8 }
   0x5   :  { %v371_v13 = vld [vmem:[%s493_s2 + $0x38] sm:$0xff]   ;;  %v377_v14 = vld [vmem:[%s494_s4 + $0x28] sm:$0xff]   ;;  %v26_v15 = vld [vmem:[%s495_s0] sm:$0xf]  ;;  %363 = vset.pattern.permute.xlu0 %v386_v26 }
   0x6   :  { %v378_v16 = vld [vmem:[%s494_s4 + $0x30] sm:$0xff]   ;;  %v379_v17 = vld [vmem:[%s494_s4 + $0x38] sm:$0xff]   ;;  %v284_v18 = vld [vmem:[%s496_s3] ss:$0 sm:$0xff] }
   0x7   :  { %323 = vmatpush3.bf16.msra.mxu0 %v365_v2  ;;  %343 = vmatpush3.bf16.msra.mxu1 %v373_v6  ;;  %v293_v29 = vld [vmem:[%s497_s5] ss:$0 sm:$0xff] }
   0x8   :  { %324 = vmatprep.subr.bf16.mxu0 %v384_v0  ;;  %344 = vmatprep.subr.bf16.mxu1 %v384_v0  ;;  %v266_v36 = vld [vmem:[%s499_s1] sm:$0xff] }
   0xb   :  { %325 = vmatpush3.bf16.msra.mxu0 %v366_v3  ;;  %345 = vmatpush3.bf16.msra.mxu1 %v374_v8 }
   0xc   :  { %326 = vmatprep.subr.bf16.mxu0 %v384_v0  ;;  %346 = vmatprep.subr.bf16.mxu1 %v384_v0 }
   0xf   :  { %327 = vmatpush3.bf16.msra.mxu0 %v367_v5  ;;  %347 = vmatpush3.bf16.msra.mxu1 %v375_v10 }
  0x10   :  { %328 = vmatprep.subr.bf16.mxu0 %v384_v0  ;;  %348 = vmatprep.subr.bf16.mxu1 %v384_v0 }
  0x13   :  { %329 = vmatpush3.bf16.msra.mxu0 %v368_v7  ;;  %349 = vmatpush3.bf16.msra.mxu1 %v376_v12 }
  0x14   :  { %330 = vmatprep.subr.bf16.mxu0 %v384_v0  ;;  %350 = vmatprep.subr.bf16.mxu1 %v384_v0 }
  0x17   :  { %331 = vmatpush3.bf16.msra.mxu0 %v369_v9  ;;  %351 = vmatpush3.bf16.msra.mxu1 %v377_v14 }
  0x18   :  { %332 = vmatprep.subr.bf16.mxu0 %v384_v0  ;;  %352 = vmatprep.subr.bf16.mxu1 %v384_v0 }
  0x1b   :  { %333 = vmatpush3.bf16.msra.mxu0 %v370_v11  ;;  %353 = vmatpush3.bf16.msra.mxu1 %v378_v16 }
  0x1c   :  { %334 = vmatprep.subr.bf16.mxu0 %v384_v0  ;;  %354 = vmatprep.subr.bf16.mxu1 %v384_v0 }
  0x1f   :  { %335 = vmatpush3.bf16.msra.mxu0 %v371_v13  ;;  %355 = vmatpush3.bf16.msra.mxu1 %v379_v17 }
  0x22   :  { %337 = vmatmul.mubr.bf16.vlgmr.msra.gmra.mrb[0].mxu0 %v26_v15 }
  0xf5   :  { %v132_v19 = vpop.f32.mrb[0].mxu0 }
  0xf6   :  { %v133_v20 = vadd.f32 %v284_v18, %v132_v19  ;;  %v338_v21 = vpop.f32.mrb[1].mxu0 }
  0xf7   :  { %v135_v22 = vpop.f32.mrb[2].mxu0 }
  0xf8   :  { %v138_v23 = vmax.f32 %v133_v20, 0.0  ;;  %v339_v24 = vpop.f32.mrb[3].mxu0 }
  0xfa   :  { %v139_v25 = vpack.c.bf16 %v138_v23, %v138_v23 }
  0xfc   :  { %357 = vmatmul.mubr.bf16.vlgmr.msra.gmra.mrb[0].mxu1 %v139_v25 }
 0x1cf   :  { %v245_v30 = vpop.f32.mrb[0].mxu1 }
 0x1d0   :  { %v246_v31 = vadd.f32 %v293_v29, %v245_v30  ;;  %v358_v32 = vpop.f32.mrb[1].mxu1 }
 0x1d1   :  { %v248_v33 = vpop.f32.mrb[2].mxu1 }
 0x1d2   :  { %251 = vst [vmem:[%s498_s6] sm:$0xff] %v246_v31  ;;  %v359_v34 = vpop.f32.mrb[3].mxu1  ;;  %v255_v35 = vsel %vm254_vm1, %v246_v31, -1e+30 }
 0x1d3   :  { %256 = vmax.xlane.f32.xlu0 %v255_v35 }
 0x1e9   :  { %268 = vperm.xlu0 %363, %v266_v36  }
 0x260   :  { %v257_v37 = vpop.xlane.xlu0 %256 }
 0x261   :  { %v258_v38 = vsub.f32 %v255_v35, %v257_v37 }
 0x263   :  { %v259_v39 = vmul.f32 1.442695, %v258_v38 }
 0x265   :  { %380 = vpow2.f32 %v259_v39 }
 0x268   :  { %v269_v40 = vpop.permute.xlu0 %268 }
 0x269   :  { %vm270_vm2 = vcmp.eq.s32.totalorder %v253_v28, %v269_v40 }
 0x26a   :  { %v271_v42 = vsel %vm270_vm2, %v255_v35, 0.0 }
 0x26f   :  { %v381_v41 = vpop.eup %380 }
 0x270   :  { %261 = vadd.xlane.f32.xlu1 %v381_v41 }
 0x274   :  { %272 = vadd.xlane.f32.xlu1 %v271_v42 }
 0x2fd   :  { %v262_v43 = vpop.xlane.xlu1 %261 }
 0x2fe   :  { %382 = vlog2.f32 %v262_v43 }
 0x301   :  { %v273_v47 = vpop.xlane.xlu1 %272 }
 0x308   :  { %v383_v44 = vpop.eup %382 }
 0x309   :  { %v264_v45 = vmul.f32 0.6931472, %v383_v44 }
 0x30b   :  { %v265_v46 = vadd.f32 %v264_v45, %v257_v37 }
 0x30d   :  { %v274_v48 = vsub.f32 %v265_v46, %v273_v47 }
 0x30f   :  { %275 = vst [vmem:[%s500_s7] sm:$0xff] %v274_v48 }

</bundles_post_ra>
